<compile_context>
chip_gen: v5e
topology: v5e:2x2
jax: 0.10.0
libtpu: 0.0.40
codegen_flags: <defaults>
</compile_context>

<pallas_src>
import numpy as np
import jax
import jax.numpy as jnp
from jax.experimental import pallas as pl
from jax.experimental.pallas import tpu as pltpu

H = 50            # conv "height" (kernel height is 1 -> pure batch axis)
W_IN = 12         # input width
KW = 6            # conv kernel width
PAD = 2           # zero padding on each side of W
W_OUT = W_IN + 2 * PAD - KW + 1   # 11
C_OUT = 2

_C1 = 0.7978845608028654          # sqrt(2/pi)
_C2 = _C1 * 0.044715

# Static scatter tensor S[kw, c, wo] = 1 iff input column c feeds output column wo
# through tap kw (i.e. c == wo + kw - PAD).  Taps that would land in the zero
# padding are simply absent -> no padded intermediate is ever materialized.
_S_np = np.zeros((KW, W_IN, W_OUT), np.float32)
for _wo in range(W_OUT):
    for _kw in range(KW):
        _c = _wo + _kw - PAD
        if 0 <= _c < W_IN:
            _S_np[_kw, _c, _wo] = 1.0
_S = jnp.asarray(_S_np)


def conv_gelu_kernel(x_ref, wm_ref, b_ref, o_ref):
    # x_ref : (1, 1, H, W_IN)      f32 VMEM  -- raw NCHW input
    # wm_ref: (W_IN, C_OUT*W_OUT)  f32 VMEM  -- banded conv weight matrix
    # b_ref : (1, C_OUT*W_OUT)     f32 VMEM  -- per-output-column bias
    # o_ref : (1, C_OUT, H, W_OUT) f32 VMEM  -- final NCHW output
    x = x_ref[0, 0, :, :]                                            # (50, 12)

    # Conv(1->2, kernel (1,6), pad (0,2)) == one small MXU matmul + bias row.
    v1 = jnp.dot(x, wm_ref[...],
                 preferred_element_type=jnp.float32,
                 precision=jax.lax.Precision.HIGHEST) + b_ref[...]   # (50, 22)

    # tanh-GELU chain, algebraically folded:
    #   v9 = 0.5*v1 * (1 + tanh(v1*(C1 + C2*v1^2)))
    sq = v1 * v1
    t = jnp.tanh(v1 * (_C1 + _C2 * sq))
    v9 = (0.5 * v1) * (t + 1.0)

    # Channel-major columns: cols [0:11] -> channel 0, [11:22] -> channel 1.
    o_ref[0, 0, :, :] = v9[:, :W_OUT]
    o_ref[0, 1, :, :] = v9[:, W_OUT:]


@jax.jit
def conv_gelu(x_nchw, weight, bias):
    # x_nchw: (1, 1, H, W_IN); weight: (C_OUT, 1, 1, KW) OIHW; bias: (C_OUT,)
    w2 = weight[:, 0, 0, :].astype(jnp.float32)                      # (2, 6)
    # Banded matrix: Wm[c, oc*W_OUT + wo] = weight[oc, c - wo + PAD] (0 where the
    # tap falls in the zero padding).  Params-only prep; x is untouched.
    wm = jnp.einsum('ok,kcw->cow', w2, _S,
                    precision=jax.lax.Precision.HIGHEST
                    ).reshape(W_IN, C_OUT * W_OUT)                   # (12, 22)
    b_row = jnp.repeat(bias.astype(jnp.float32), W_OUT)[None, :]     # (1, 22)

    return pl.pallas_call(
        conv_gelu_kernel,
        out_shape=jax.ShapeDtypeStruct((1, C_OUT, H, W_OUT), jnp.float32),
        in_specs=[
            pl.BlockSpec(memory_space=pltpu.MemorySpace.VMEM),
            pl.BlockSpec(memory_space=pltpu.MemorySpace.VMEM),
            pl.BlockSpec(memory_space=pltpu.MemorySpace.VMEM),
        ],
        out_specs=pl.BlockSpec(memory_space=pltpu.MemorySpace.VMEM),
    )(x_nchw.astype(jnp.float32), wm, b_row)


def _reference(x_nchw, weight, bias):
    # Pure-JAX reference (shifted-FMA formulation of the same conv) for sanity.
    x = x_nchw[0, 0].astype(jnp.float32)                             # (H, W_IN)
    xp = jnp.pad(x, ((0, 0), (PAD, PAD)))                            # (H, W_PAD)
    w = weight[:, 0, 0, :].astype(jnp.float32)                       # (C_OUT, KW)
    outs = []
    for oc in range(C_OUT):
        acc = jnp.full((H, W_OUT), bias[oc], jnp.float32)
        for kw in range(KW):
            acc = acc + xp[:, kw:kw + W_OUT] * w[oc, kw]
        outs.append(acc)
    v1 = jnp.stack(outs, axis=0)[None]                               # (1, 2, 50, 11)
    v2 = v1 * 0.5
    v5 = v1 + (v1 * v1 * v1) * 0.044715
    return v2 * (jnp.tanh(v5 * 0.7978845608028654) + 1.0)


if __name__ == "__main__":
    key = jax.random.PRNGKey(0)
    kx, kw_, kb = jax.random.split(key, 3)

    # Deterministic parameter init (shapes from nn.Conv2d(1, 2, (1, 6), bias=True)).
    fan_in = 1 * 1 * KW
    bound = 1.0 / (fan_in ** 0.5)
    weight = jax.random.uniform(kw_, (C_OUT, 1, 1, KW), jnp.float32, -bound, bound)
    bias = jax.random.uniform(kb, (C_OUT,), jnp.float32, -bound, bound)

    x1 = jax.random.normal(kx, (1, 1, H, W_IN), jnp.float32)

    out = conv_gelu(x1, weight, bias)
    jax.block_until_ready(out)
    assert out.shape == (1, C_OUT, H, W_OUT)

    ref = _reference(x1, weight, bias)
    assert jnp.allclose(out, ref, rtol=1e-4, atol=1e-4)
    print("KERNEL_OK")
</pallas_src>

<mosaic_0001>
module attributes {stable_mosaic.version = 11 : i64} {
  func.func @conv_gelu_kernel(%arg0: memref<1x1x50x12xf32, #tpu.memory_space<vmem>>, %arg1: memref<12x22xf32, #tpu.memory_space<vmem>>, %arg2: memref<1x22xf32, #tpu.memory_space<vmem>>, %arg3: memref<1x2x50x11xf32, #tpu.memory_space<vmem>>) attributes {dimension_semantics = [], scalar_prefetch = 0 : i64, scratch_operands = 0 : i64, tpu.core_type = #tpu.core_type<tc>} {
    %c0 = arith.constant 0 : index
    %c0_0 = arith.constant 0 : index
    %c0_1 = arith.constant 0 : index
    %c0_2 = arith.constant 0 : index
    %0 = vector.load %arg0[%c0, %c0_0, %c0_1, %c0_2] : memref<1x1x50x12xf32, #tpu.memory_space<vmem>>, vector<1x1x50x12xf32>
    %1 = vector.shape_cast %0 : vector<1x1x50x12xf32> to vector<50x12xf32>
    %c0_3 = arith.constant 0 : index
    %c0_4 = arith.constant 0 : index
    %2 = vector.load %arg1[%c0_3, %c0_4] : memref<12x22xf32, #tpu.memory_space<vmem>>, vector<12x22xf32>
    %cst = arith.constant dense<0.000000e+00> : vector<50x22xf32>
    %3 = tpu.matmul %1, %2, %cst {dimension_numbers = #tpu.dot_dimension_numbers<[1], [0], [0], [1], [0, 0, 1, 1], [], []>, precision = #tpu.contract_precision<fp32>} : vector<50x12xf32>, vector<12x22xf32>, vector<50x22xf32> -> vector<50x22xf32>
    %c0_5 = arith.constant 0 : index
    %c0_6 = arith.constant 0 : index
    %4 = vector.load %arg2[%c0_5, %c0_6] : memref<1x22xf32, #tpu.memory_space<vmem>>, vector<1x22xf32>
    %5 = vector.broadcast %4 : vector<1x22xf32> to vector<50x22xf32>
    %6 = arith.addf %3, %5 : vector<50x22xf32>
    %7 = arith.mulf %6, %6 : vector<50x22xf32>
    %cst_7 = arith.constant 0.0356774069 : f32
    %8 = vector.broadcast %cst_7 : f32 to vector<50x22xf32>
    %9 = arith.mulf %8, %7 : vector<50x22xf32>
    %cst_8 = arith.constant 0.797884583 : f32
    %10 = vector.broadcast %cst_8 : f32 to vector<50x22xf32>
    %11 = arith.addf %10, %9 : vector<50x22xf32>
    %12 = arith.mulf %6, %11 : vector<50x22xf32>
    %13 = math.tanh %12 : vector<50x22xf32>
    %cst_9 = arith.constant 5.000000e-01 : f32
    %14 = vector.broadcast %cst_9 : f32 to vector<50x22xf32>
    %15 = arith.mulf %14, %6 : vector<50x22xf32>
    %cst_10 = arith.constant 1.000000e+00 : f32
    %16 = vector.broadcast %cst_10 : f32 to vector<50x22xf32>
    %17 = arith.addf %13, %16 : vector<50x22xf32>
    %18 = arith.mulf %15, %17 : vector<50x22xf32>
    %19 = vector.extract_strided_slice %18 {offsets = [0, 0], sizes = [50, 11], strides = [1, 1]} : vector<50x22xf32> to vector<50x11xf32>
    %c0_11 = arith.constant 0 : index
    %c0_12 = arith.constant 0 : index
    %c0_13 = arith.constant 0 : index
    %c0_14 = arith.constant 0 : index
    %20 = vector.load %arg3[%c0_11, %c0_12, %c0_13, %c0_14] : memref<1x2x50x11xf32, #tpu.memory_space<vmem>>, vector<1x1x50x11xf32>
    %21 = vector.shape_cast %20 : vector<1x1x50x11xf32> to vector<50x11xf32>
    %22 = vector.shape_cast %19 : vector<50x11xf32> to vector<1x1x50x11xf32>
    tpu.vector_store %arg3[%c0_11, %c0_12, %c0_13, %c0_14], %22 {strides = array<i32>} : memref<1x2x50x11xf32, #tpu.memory_space<vmem>>, vector<1x1x50x11xf32>,
    %23 = vector.extract_strided_slice %18 {offsets = [0, 11], sizes = [50, 11], strides = [1, 1]} : vector<50x22xf32> to vector<50x11xf32>
    %c0_15 = arith.constant 0 : index
    %c1 = arith.constant 1 : index
    %c0_16 = arith.constant 0 : index
    %c0_17 = arith.constant 0 : index
    %24 = vector.load %arg3[%c0_15, %c1, %c0_16, %c0_17] : memref<1x2x50x11xf32, #tpu.memory_space<vmem>>, vector<1x1x50x11xf32>
    %25 = vector.shape_cast %24 : vector<1x1x50x11xf32> to vector<50x11xf32>
    %26 = vector.shape_cast %23 : vector<50x11xf32> to vector<1x1x50x11xf32>
    tpu.vector_store %arg3[%c0_15, %c1, %c0_16, %c0_17], %26 {strides = array<i32>} : memref<1x2x50x11xf32, #tpu.memory_space<vmem>>, vector<1x1x50x11xf32>,
    return
  }
}

</mosaic_0001>

<bundles_post_ra>
// kernel: conv_gelu.1
= control target key start
LH: loop header
LB: loop body
LE: loop exit
PB: predicated region body
PF: predicated region fallthrough
CT: control target
= control target key end

     0   :  { %vm49_vm0 = vcmask 1043456   ;;  %vm27_vm1 = vcmask 97280   ;;  %vm454_vm2 = vcmask 89088   ;;  %vm461_vm3 = vcmask 82944   ;;  %s743_s1 = inlined_call_operand.vmem [shape: f32[12,22], index: 1, kind: input, shape index: {}]   ;;  %s744_s0 = inlined_call_operand.vmem [shape: f32[1,1,50,12], index: 0, kind: input, shape index: {}]   ;;  %s745_s2 = inlined_call_operand.vmem [shape: f32[1,22], index: 2, kind: input, shape index: {}]   ;;  %s746_s3 = inlined_call_operand.vmem [shape: f32[1,2,50,11], index: 3, kind: output, shape index: {}]  }
   0x1   :  { %v22_v0 = vld [vmem:[%s743_s1 + $0x8] sm:$0xf]  ;;  %v21_v1 = vld [vmem:[%s743_s1] sm:$0xff]  ;;  %v20_v13 = vld [vmem:[%s744_s0 + $0x30] sm:$0x3] }
   0x2   :  { %v18_v2 = vld [vmem:[%s744_s0 + $0x20] sm:$0xff]  ;;  %v51_v3 = vsel %vm49_vm0, %v22_v0, 0  ;;  %v560_v4 = vand.u32 4294901760, %v21_v1  ;;  %v19_v7 = vld [vmem:[%s744_s0 + $0x28] sm:$0xff]  ;;  %v16_v18 = vld [vmem:[%s744_s0 + $0x10] sm:$0xff]  ;;  %v47_v25 = vsel %vm27_vm1, %v20_v13, 0 }
   0x3   :  { %v41_v5 = vsel %vm27_vm1, %v18_v2, 0  ;;  %v14_v6 = vld [vmem:[%s744_s0] sm:$0xff]  ;;  %v15_v8 = vld [vmem:[%s744_s0 + $0x8] sm:$0xff]  ;;  %v67_v9 = vand.u32 4294901760, %v51_v3  ;;  %v44_v12 = vsel %vm27_vm1, %v19_v7, 0  ;;  %v35_v29 = vsel %vm27_vm1, %v16_v18, 0 }
   0x4   :  { %v572_v10 = vand.u32 4294901760, %v41_v5  ;;  %v29_v11 = vsel %vm27_vm1, %v14_v6, 0  ;;  %v149_v14 = vsub.f32 %v21_v1, %v560_v4  ;;  %v582_v16 = vand.u32 4294901760, %v44_v12  ;;  %v17_v43 = vld [vmem:[%s744_s0 + $0x18] sm:$0xff] }
   0x5   :  { %v580_v15 = vand.u32 4294901760, %v29_v11  ;;  %v32_v17 = vsel %vm27_vm1, %v15_v8, 0  ;;  %510 = vmatpush.msra.mxu2 %v67_v9  ;;  %68 = vmatpush.msra.mxu0 %v67_v9  ;;  %v143_v20 = vsub.f32 %v51_v3, %v67_v9  ;;  %v612_v35 = vand.u32 4294901760, %v47_v25  ;;  %v661_v8 = vld [vmem:[%s745_s2] ss:$0 sm:$0xff]  ;;  %s530_s2 = smov 117  }
   0x6   :  { %v589_v19 = vsub.f32 %v41_v5, %v572_v10  ;;  %v591_v21 = vand.u32 4294901760, %v32_v17  ;;  %v150_v22 = vand.u32 4294901760, %v149_v14  ;;  %v597_v24 = vsub.f32 %v44_v12, %v582_v16 }
   0x7   :  { %v594_v23 = vsub.f32 %v29_v11, %v580_v15  ;;  %511 = vmatpush.msra.mxu2 %v560_v4  ;;  %v144_v27 = vand.u32 4294901760, %v143_v20  ;;  %70 = vmatpush.msra.mxu0 %v560_v4  ;;  %v87_v38 = vand.u32 4294901760, %v35_v29  ;;  %v120_v45 = vsub.f32 %v47_v25, %v612_v35 }
   0x8   :  { %v105_v26 = vand.u32 4294901760, %v589_v19  ;;  %v604_v28 = vsub.f32 %v32_v17, %v591_v21  ;;  %v151_v30 = vsub.f32 %v149_v14, %v150_v22  ;;  %v113_v34 = vand.u32 4294901760, %v597_v24 }
   0x9   :  { %199 = vmatpush.msrb.mxu2 %v143_v20  ;;  %v73_v31 = vand.u32 4294901760, %v594_v23  ;;  %v145_v33 = vsub.f32 %v143_v20, %v144_v27  ;;  %317 = vmatpush.msrb.mxu0 %v144_v27  ;;  %v88_v47 = vsub.f32 %v35_v29, %v87_v38  ;;  %v38_v48 = vsel %vm27_vm1, %v17_v43, 0 }
   0xa   :  { %v106_v32 = vsub.f32 %v589_v19, %v105_v26  ;;  %v81_v37 = vand.u32 4294901760, %v604_v28  ;;  %v152_v41 = vand.u32 4294901760, %v151_v30  ;;  %v114_v44 = vsub.f32 %v597_v24, %v113_v34 }
   0xb   :  { %v74_v36 = vsub.f32 %v594_v23, %v73_v31  ;;  %202 = vmatpush.msrb.mxu2 %v149_v14  ;;  %v146_v40 = vand.u32 4294901760, %v145_v33  ;;  %321 = vmatpush.msrb.mxu0 %v150_v22  ;;  %v121_v50 = vand.u32 4294901760, %v120_v45  ;;  %v89_v52 = vand.u32 4294901760, %v88_v47 }
   0xc   :  { %v107_v39 = vand.u32 4294901760, %v106_v32  ;;  %v82_v46 = vsub.f32 %v604_v28, %v81_v37  ;;  %v115_v49 = vand.u32 4294901760, %v114_v44  ;;  %v95_v53 = vand.u32 4294901760, %v38_v48 }
   0xd   :  { %v75_v42 = vand.u32 4294901760, %v74_v36  ;;  %512 = vmatpush.msra.mxu3 %v146_v40  ;;  %147 = vmatpush.msra.mxu1 %v146_v40  ;;  %v122_v54 = vsub.f32 %v120_v45, %v121_v50  ;;  %v90_v55 = vsub.f32 %v88_v47, %v89_v52 }
   0xe   :  { %108 = vmatmul.f32.vlgmr.msra.gmra.mxu2 %v107_v39  ;;  %v83_v51 = vand.u32 4294901760, %v82_v46  ;;  %v96_v56 = vsub.f32 %v38_v48, %v95_v53 }
   0xf   :  { %76 = vmatmul.f32.vlgmr.msra.gmra.mxu0 %v75_v42  ;;  %513 = vmatpush.msra.mxu3 %v152_v41  ;;  %v123_v57 = vand.u32 4294901760, %v122_v54  ;;  %v91_v58 = vand.u32 4294901760, %v90_v55 }
  0x10   :  { %171 = vmatmul.f32.vlgmr.msra.gmra.mxu3 %v572_v10  ;;  %153 = vmatpush.msra.mxu1 %v152_v41  ;;  %v97_v59 = vand.u32 4294901760, %v96_v56 }
  0x11   :  { %254 = vmatpush.msrb.mxu3 %v67_v9  ;;  %155 = vmatmul.f32.vlgmr.msra.gmra.mxu1 %v580_v15 }
  0x12   :  { %366 = vmatpush.msrb.mxu1 %v67_v9  ;;  %v98_v60 = vsub.f32 %v96_v56, %v97_v59 }
  0x13   :  { %256 = vmatpush.msrb.mxu3 %v560_v4 }
  0x14   :  { %368 = vmatpush.msrb.mxu1 %v560_v4  ;;  %v99_v61 = vand.u32 4294901760, %v98_v60 }
  0x16   :  { %116 = vmatmul.f32.gmra.mxu2 %v115_v49 }
  0x17   :  { %84 = vmatmul.f32.gmra.mxu0 %v83_v51 }
  0x18   :  { %175 = vmatmul.f32.gmra.mxu3 %v582_v16 }
  0x19   :  { %159 = vmatmul.f32.gmra.mxu1 %v591_v21 }
  0x1e   :  { %124 = vmatmul.f32.gmra.mxu2 %v123_v57 }
  0x1f   :  { %92 = vmatmul.f32.gmra.mxu0 %v91_v58 }
  0x20   :  { %179 = vmatmul.f32.gmra.mxu3 %v612_v35 }
  0x21   :  { %163 = vmatmul.f32.gmra.mxu1 %v87_v38 }
  0x26   :  { %205 = vmatmul.f32.vlgmr.msrb.gmra.mxu2 %v594_v23 }
  0x27   :  { %100 = vmatmul.f32.gmra.mxu0 %v99_v61 }
  0x28   :  { %260 = vmatmul.f32.vlgmr.msrb.gmra.mxu3 %v73_v31 }
  0x29   :  { %167 = vmatmul.f32.gmra.mxu1 %v95_v53 }
  0x2e   :  { %210 = vmatmul.f32.gmra.mxu2 %v604_v28 }
  0x2f   :  { %323 = vmatmul.f32.vlgmr.msrb.gmra.mxu0 %v580_v15 }
  0x30   :  { %266 = vmatmul.f32.gmra.mxu3 %v81_v37 }
  0x31   :  { %370 = vmatmul.f32.vlgmr.msrb.gmra.mxu1 %v580_v15 }
  0x36   :  { %215 = vmatmul.f32.gmra.mxu2 %v88_v47 }
  0x37   :  { %327 = vmatmul.f32.gmra.mxu0 %v591_v21 }
  0x38   :  { %272 = vmatmul.f32.gmra.mxu3 %v89_v52 }
  0x39   :  { %374 = vmatmul.f32.gmra.mxu1 %v591_v21 }
  0x3e   :  { %220 = vmatmul.f32.gmra.mxu2 %v96_v56 }
  0x3f   :  { %331 = vmatmul.f32.gmra.mxu0 %v87_v38 }
  0x40   :  { %278 = vmatmul.f32.gmra.mxu3 %v97_v59 }
  0x41   :  { %378 = vmatmul.f32.gmra.mxu1 %v87_v38 }
  0x46   :  { %225 = vmatmul.f32.gmra.mxu2 %v589_v19 }
  0x47   :  { %335 = vmatmul.f32.gmra.mxu0 %v95_v53 }
  0x48   :  { %284 = vmatmul.f32.gmra.mxu3 %v105_v26 }
  0x49   :  { %382 = vmatmul.f32.gmra.mxu1 %v95_v53 }
  0x4e   :  { %230 = vmatmul.f32.gmra.mxu2 %v597_v24 }
  0x4f   :  { %339 = vmatmul.f32.gmra.mxu0 %v572_v10 }
  0x50   :  { %290 = vmatmul.f32.gmra.mxu3 %v113_v34 }
  0x51   :  { %386 = vmatmul.f32.gmra.mxu1 %v572_v10 }
  0x56   :  { %235 = vmatmul.f32.gmra.mxu2 %v120_v45 }
  0x57   :  { %343 = vmatmul.f32.gmra.mxu0 %v582_v16 }
  0x58   :  { %296 = vmatmul.f32.gmra.mxu3 %v121_v50 }
  0x59   :  { %390 = vmatmul.f32.gmra.mxu1 %v582_v16 }
  0x5f   :  { %347 = vmatmul.f32.gmra.mxu0 %v612_v35 }
  0x61   :  { %394 = vmatmul.f32.gmra.mxu1 %v612_v35 }
  0x8c   :  { %v77_v62 = vpop.f32.mrf.mxu0 }
  0x8d   :  { %v78_v10 = vadd.f32 %v661_v8, %v77_v62 }
  0x8e   :  { %v156_v63 = vpop.f32.mrf.mxu1 }
  0x8f   :  { %v157_v14 = vadd.f32 %v156_v63, %v78_v10 }
  0x91   :  { %v650_v0 = vpop.f32.mrf.mxu2 }
  0x92   :  { %v110_v59 = vadd.f32 %v661_v8, %v650_v0 }
  0x93   :  { %v652_v1 = vpop.f32.mrf.mxu3 }
  0x94   :  { %v85_v2 = vpop.f32.mrf.mxu0  ;;  %v173_v10 = vadd.f32 %v652_v1, %v110_v59 }
  0x95   :  { %v86_v17 = vadd.f32 %v661_v8, %v85_v2 }
  0x96   :  { %v160_v3 = vpop.f32.mrf.mxu1 }
  0x97   :  { %v161_v23 = vadd.f32 %v160_v3, %v86_v17 }
  0x99   :  { %v654_v4 = vpop.f32.mrf.mxu2 }
  0x9b   :  { %v656_v5 = vpop.f32.mrf.mxu3 }
  0x9c   :  { %v93_v6 = vpop.f32.mrf.mxu0 }
  0x9d   :  { %v94_v28 = vadd.f32 %v661_v8, %v93_v6 }
  0x9e   :  { %v164_v7 = vpop.f32.mrf.mxu1 }
  0x9f   :  { %v165_v36 = vadd.f32 %v164_v7, %v94_v28 }
  0xa1   :  { %v663_v9 = vpop.f32.mrf.mxu2 }
  0xa3   :  { %v666_v11 = vpop.f32.mrf.mxu3 }
  0xa4   :  { %v101_v12 = vpop.f32.mrf.mxu0 }
  0xa5   :  { %v102_v42 = vadd.f32 %v661_v8, %v101_v12 }
  0xa6   :  { %v168_v13 = vpop.f32.mrf.mxu1 }
  0xa7   :  { %v169_v50 = vadd.f32 %v168_v13, %v102_v42 }
  0xa9   :  { %v206_v15 = vpop.f32.mrf.mxu2 }
  0xaa   :  { %v207_v16 = vadd.f32 %v206_v15, %v157_v14 }
  0xab   :  { %v261_v18 = vpop.f32.mrf.mxu3 }
  0xac   :  { %v324_v19 = vpop.f32.mrf.mxu0  ;;  %v262_v20 = vadd.f32 %v261_v18, %v207_v16 }
  0xae   :  { %v325_v21 = vadd.f32 %v324_v19, %v262_v20  ;;  %v371_v22 = vpop.f32.mrf.mxu1  ;;  %v118_v19 = vadd.f32 %v661_v8, %v654_v4 }
  0xb0   :  { %v372_v24 = vadd.f32 %v371_v22, %v325_v21 }
  0xb1   :  { %v211_v25 = vpop.f32.mrf.mxu2 }
  0xb2   :  { %v212_v26 = vadd.f32 %v211_v25, %v161_v23  ;;  %v398_v27 = vmul.f32 %v372_v24, %v372_v24  ;;  %v433_v56 = vmul.f32 0.5, %v372_v24 }
  0xb3   :  { %v267_v29 = vpop.f32.mrf.mxu3 }
  0xb4   :  { %v328_v30 = vpop.f32.mrf.mxu0  ;;  %v405_v31 = vmul.f32 0.035677407, %v398_v27  ;;  %v268_v32 = vadd.f32 %v267_v29, %v212_v26  ;;  %v177_v27 = vadd.f32 %v656_v5, %v118_v19 }
  0xb6   :  { %v412_v33 = vadd.f32 0.7978846, %v405_v31  ;;  %v329_v34 = vadd.f32 %v328_v30, %v268_v32  ;;  %v375_v35 = vpop.f32.mrf.mxu1 }
  0xb8   :  { %v419_v37 = vmul.f32 %v412_v33, %v372_v24  ;;  %v376_v38 = vadd.f32 %v375_v35, %v329_v34  ;;  %v126_v35 = vadd.f32 %v661_v8, %v663_v9 }
  0xb9   :  { %v216_v39 = vpop.f32.mrf.mxu2 }
  0xba   :  { %v217_v40 = vadd.f32 %v216_v39, %v165_v36  ;;  %v399_v41 = vmul.f32 %v376_v38, %v376_v38  ;;  %516 = vtanh.f32 %v419_v37  ;;  %v434_v15 = vmul.f32 0.5, %v376_v38 }
  0xbb   :  { %v273_v43 = vpop.f32.mrf.mxu3 }
  0xbc   :  { %v332_v44 = vpop.f32.mrf.mxu0  ;;  %v406_v45 = vmul.f32 0.035677407, %v399_v41  ;;  %v274_v46 = vadd.f32 %v273_v43, %v217_v40  ;;  %v181_v43 = vadd.f32 %v666_v11, %v126_v35 }
  0xbe   :  { %v413_v47 = vadd.f32 0.7978846, %v406_v45  ;;  %v333_v48 = vadd.f32 %v332_v44, %v274_v46  ;;  %v379_v49 = vpop.f32.mrf.mxu1 }
  0xc0   :  { %v517_v51 = vpop.eup %516  ;;  %v420_v52 = vmul.f32 %v413_v47, %v376_v38  ;;  %v380_v53 = vadd.f32 %v379_v49, %v333_v48 }
  0xc1   :  { %v221_v54 = vpop.f32.mrf.mxu2  ;;  %v440_v57 = vadd.f32 1.0, %v517_v51 }
  0xc2   :  { %v222_v55 = vadd.f32 %v221_v54, %v169_v50  ;;  %518 = vtanh.f32 %v420_v52  ;;  %v400_v58 = vmul.f32 %v380_v53, %v380_v53  ;;  %v435_v32 = vmul.f32 0.5, %v380_v53 }
  0xc3   :  { %v279_v60 = vpop.f32.mrf.mxu3  ;;  %v447_v62 = vmul.f32 %v440_v57, %v433_v56 }
  0xc4   :  { %v336_v61 = vpop.f32.mrf.mxu0  ;;  %v407_v63 = vmul.f32 0.035677407, %v400_v58  ;;  %v280_v2 = vadd.f32 %v279_v60, %v222_v55 }
  0xc5   :  { %470 = vrot.lane.b32.xlu0 %v447_v62, %s530_s2  ;;  %455 = vst.msk [vmem:[%s746_s3] sm:$0xff] %vm454_vm2, %v447_v62 }
  0xc6   :  { %v414_v3 = vadd.f32 0.7978846, %v407_v63  ;;  %v337_v6 = vadd.f32 %v336_v61, %v280_v2  ;;  %v383_v7 = vpop.f32.mrf.mxu1 }
  0xc8   :  { %v519_v12 = vpop.eup %518  ;;  %v421_v0 = vmul.f32 %v414_v3, %v380_v53  ;;  %v384_v13 = vadd.f32 %v383_v7, %v337_v6 }
  0xc9   :  { %v226_v14 = vpop.f32.mrf.mxu2  ;;  %v441_v17 = vadd.f32 1.0, %v519_v12 }
  0xca   :  { %v227_v16 = vadd.f32 %v226_v14, %v173_v10  ;;  %v401_v18 = vmul.f32 %v384_v13, %v384_v13  ;;  %520 = vtanh.f32 %v421_v0  ;;  %v436_v46 = vmul.f32 0.5, %v384_v13 }
  0xcb   :  { %v285_v20 = vpop.f32.mrf.mxu3  ;;  %v448_v22 = vmul.f32 %v441_v17, %v434_v15 }
  0xcc   :  { %v340_v21 = vpop.f32.mrf.mxu0  ;;  %v408_v23 = vmul.f32 0.035677407, %v401_v18  ;;  %v286_v24 = vadd.f32 %v285_v20, %v227_v16 }
  0xcd   :  { %456 = vst.msk [vmem:[%s746_s3 + $0x8] sm:$0xff] %vm454_vm2, %v448_v22  ;;  %472 = vrot.lane.b32.xlu0 %v448_v22, %s530_s2 }
  0xce   :  { %v415_v1 = vadd.f32 0.7978846, %v408_v23  ;;  %v341_v25 = vadd.f32 %v340_v21, %v286_v24  ;;  %v387_v26 = vpop.f32.mrf.mxu1 }
  0xd0   :  { %v521_v28 = vpop.eup %520  ;;  %v422_v29 = vmul.f32 %v415_v1, %v384_v13  ;;  %v388_v4 = vadd.f32 %v387_v26, %v341_v25 }
  0xd1   :  { %v231_v30 = vpop.f32.mrf.mxu2  ;;  %v442_v33 = vadd.f32 1.0, %v521_v28 }
  0xd2   :  { %v232_v31 = vadd.f32 %v231_v30, %v177_v27  ;;  %522 = vtanh.f32 %v422_v29  ;;  %v402_v34 = vmul.f32 %v388_v4, %v388_v4  ;;  %v437_v60 = vmul.f32 0.5, %v388_v4 }
  0xd3   :  { %v291_v36 = vpop.f32.mrf.mxu3  ;;  %v449_v38 = vmul.f32 %v442_v33, %v435_v32 }
  0xd4   :  { %v344_v37 = vpop.f32.mrf.mxu0  ;;  %v409_v39 = vmul.f32 0.035677407, %v402_v34  ;;  %v292_v40 = vadd.f32 %v291_v36, %v232_v31 }
  0xd5   :  { %474 = vrot.lane.b32.xlu1 %v449_v38, %s530_s2  ;;  %457 = vst.msk [vmem:[%s746_s3 + $0x10] sm:$0xff] %vm454_vm2, %v449_v38 }
  0xd6   :  { %v416_v5 = vadd.f32 0.7978846, %v409_v39  ;;  %v345_v41 = vadd.f32 %v344_v37, %v292_v40  ;;  %v391_v42 = vpop.f32.mrf.mxu1 }
  0xd8   :  { %v523_v44 = vpop.eup %522  ;;  %v423_v45 = vmul.f32 %v416_v5, %v388_v4  ;;  %v392_v8 = vadd.f32 %v391_v42, %v345_v41 }
  0xd9   :  { %v236_v9 = vpop.f32.mrf.mxu2  ;;  %v443_v48 = vadd.f32 1.0, %v523_v44 }
  0xda   :  { %v237_v47 = vadd.f32 %v236_v9, %v181_v43  ;;  %v403_v49 = vmul.f32 %v392_v8, %v392_v8  ;;  %524 = vtanh.f32 %v423_v45  ;;  %v438_v10 = vmul.f32 0.5, %v392_v8 }
  0xdb   :  { %v297_v50 = vpop.f32.mrf.mxu3  ;;  %v450_v52 = vmul.f32 %v443_v48, %v436_v46 }
  0xdc   :  { %v348_v51 = vpop.f32.mrf.mxu0  ;;  %v410_v53 = vmul.f32 0.035677407, %v403_v49  ;;  %v298_v54 = vadd.f32 %v297_v50, %v237_v47 }
  0xdd   :  { %458 = vst.msk [vmem:[%s746_s3 + $0x18] sm:$0xff] %vm454_vm2, %v450_v52  ;;  %476 = vrot.lane.b32.xlu1 %v450_v52, %s530_s2 }
  0xde   :  { %v417_v11 = vadd.f32 0.7978846, %v410_v53  ;;  %v349_v55 = vadd.f32 %v348_v51, %v298_v54  ;;  %v395_v56 = vpop.f32.mrf.mxu1 }
  0xe0   :  { %v525_v57 = vpop.eup %524  ;;  %v424_v58 = vmul.f32 %v417_v11, %v392_v8  ;;  %v396_v59 = vadd.f32 %v395_v56, %v349_v55 }
  0xe1   :  { %v444_v61 = vadd.f32 1.0, %v525_v57 }
  0xe2   :  { %526 = vtanh.f32 %v424_v58  ;;  %v404_v62 = vmul.f32 %v396_v59, %v396_v59  ;;  %v439_v14 = vmul.f32 0.5, %v396_v59 }
  0xe3   :  { %v451_v63 = vmul.f32 %v444_v61, %v437_v60 }
  0xe4   :  { %v411_v2 = vmul.f32 0.035677407, %v404_v62 }
  0xe5   :  { %478 = vrot.lane.b32.xlu2 %v451_v63, %s530_s2  ;;  %459 = vst.msk [vmem:[%s746_s3 + $0x20] sm:$0xff] %vm454_vm2, %v451_v63 }
  0xe6   :  { %v418_v3 = vadd.f32 0.7978846, %v411_v2 }
  0xe8   :  { %v527_v6 = vpop.eup %526  ;;  %v425_v7 = vmul.f32 %v418_v3, %v396_v59 }
  0xe9   :  { %v445_v12 = vadd.f32 1.0, %v527_v6 }
  0xea   :  { %528 = vtanh.f32 %v425_v7 }
  0xeb   :  { %v452_v0 = vmul.f32 %v445_v12, %v438_v10 }
  0xed   :  { %460 = vst.msk [vmem:[%s746_s3 + $0x28] sm:$0xff] %vm454_vm2, %v452_v0  ;;  %480 = vrot.lane.b32.xlu2 %v452_v0, %s530_s2 }
  0xf0   :  { %v529_v13 = vpop.eup %528 }
  0xf1   :  { %v446_v15 = vadd.f32 1.0, %v529_v13 }
  0xf3   :  { %v453_v16 = vmul.f32 %v446_v15, %v439_v14 }
  0xf5   :  { %482 = vrot.lane.b32.xlu0 %v453_v16, %s530_s2  ;;  %462 = vst.msk [vmem:[%s746_s3 + $0x30] sm:$0x3] %vm461_vm3, %v453_v16 }
 0x137   :  { %v471_v17 = vpop.permute.xlu0 %470 }
 0x138   :  { %503 = vst.msk [vmem:[%s746_s3 + $0x38] sm:$0xff] %vm454_vm2, %v471_v17 }
 0x13f   :  { %v479_v18 = vpop.permute.xlu2 %478  ;;  %v473_v19 = vpop.permute.xlu0 %472 }
 0x140   :  { %507 = vst.msk [vmem:[%s746_s3 + $0x58] sm:$0xff] %vm454_vm2, %v479_v18 }
 0x141   :  { %504 = vst.msk [vmem:[%s746_s3 + $0x40] sm:$0xff] %vm454_vm2, %v473_v19 }
 0x147   :  { %v481_v20 = vpop.permute.xlu2 %480  ;;  %v475_v21 = vpop.permute.xlu1 %474 }
 0x148   :  { %508 = vst.msk [vmem:[%s746_s3 + $0x60] sm:$0xff] %vm454_vm2, %v481_v20 }
 0x149   :  { %505 = vst.msk [vmem:[%s746_s3 + $0x48] sm:$0xff] %vm454_vm2, %v475_v21 }
 0x14f   :  { %v477_v22 = vpop.permute.xlu1 %476 }
 0x150   :  { %506 = vst.msk [vmem:[%s746_s3 + $0x50] sm:$0xff] %vm454_vm2, %v477_v22 }
 0x167   :  { %v483_v23 = vpop.permute.xlu0 %482 }
 0x168   :  { %509 = vst.msk [vmem:[%s746_s3 + $0x68] sm:$0x3] %vm461_vm3, %v483_v23 }

</bundles_post_ra>
